<compile_context>
chip_gen: v7x
topology: tpu7x:2x2x1
jax: 0.10.0
libtpu: 0.0.40
codegen_flags: <defaults>
</compile_context>

<pallas_src>
import jax
import jax.numpy as jnp
from jax.experimental import pallas as pl
from jax.experimental.pallas import tpu as pltpu


# --------------------------------------------------------------------------- #
# Kernel bodies
# --------------------------------------------------------------------------- #
def _copy_kernel(x_ref, o_ref):
    # Fast path: permutation lives in the BlockSpecs; body is a pure copy.
    o_ref[...] = x_ref[...]


def _make_group_loop_kernel(groups: int, HW: int):
    def kernel(x_ref, o_ref):
        # x_ref: (bb, g, cpg, HW) ; o_ref: (bb, cpg, g*HW)
        # g contiguous (cpg, HW) slab copies instead of C single-row copies.
        for j in range(groups):
            o_ref[:, :, j * HW:(j + 1) * HW] = x_ref[:, j, :, :]
    return kernel


# --------------------------------------------------------------------------- #
# Sizing helpers
# --------------------------------------------------------------------------- #
def _largest_divisor_leq(n: int, cap: int) -> int:
    cap = max(1, min(n, cap))
    for d in range(cap, 0, -1):
        if n % d == 0:
            return d
    return 1


def _pick_hw_tile(HW: int, max_elems: int) -> int:
    """Largest divisor of HW that is a multiple of 128 and <= max_elems.

    Caller guarantees HW % 128 == 0.
    """
    nchunks = HW // 128
    cap = max(1, min(nchunks, max_elems // 128))
    for k in range(cap, 0, -1):
        if nchunks % k == 0:
            return 128 * k
    return 128


# --------------------------------------------------------------------------- #
# Public wrapper
# --------------------------------------------------------------------------- #
def shuffle_layer(x: jax.Array, groups: int,
                  *, max_block_bytes: int = 8 * 1024 * 1024) -> jax.Array:
    """Channel shuffle, equivalent to PyTorch ShuffleLayer(groups)(x)."""
    B, C, H, W = x.shape
    assert C % groups == 0, "num_channels must be divisible by groups"
    cpg = C // groups
    HW = H * W
    itemsize = jnp.dtype(x.dtype).itemsize

    # Free views: NCHW is contiguous over (H, W); splitting C into (g, cpg) and
    # merging (g, HW) on the output are pure reshapes (no data movement).
    x4 = x.reshape(B, groups, cpg, HW)
    out_shape = jax.ShapeDtypeStruct((B, cpg, groups * HW), x.dtype)

    lane_ok = (HW % 128 == 0) or (groups == 1)

    if lane_ok:
        # -------- fast path: permutation folded into the BlockSpecs ---------
        group_slab = cpg * HW * itemsize
        if group_slab <= max_block_bytes:
            hw_tile = HW
            bb = _largest_divisor_leq(B, max_block_bytes // group_slab)
        else:
            bb = 1
            if HW % 128 == 0:
                hw_tile = _pick_hw_tile(
                    HW, max(128, max_block_bytes // (cpg * itemsize)))
            else:  # groups == 1 (identity), HW not 128-aligned: full extent
                hw_tile = HW
        ns = HW // hw_tile
        block_bytes = bb * cpg * hw_tile * itemsize
        grid = (B // bb, groups, ns)

        in_spec = pl.BlockSpec((bb, None, cpg, hw_tile),
                               lambda b, j, s: (b, j, 0, s))
        # Destination lanes for group j, spatial tile s: [j*HW + s*hw_tile, ...)
        out_spec = pl.BlockSpec((bb, cpg, hw_tile),
                                lambda b, j, s: (b, 0, j * ns + s))
        kernel = _copy_kernel
        dim_sem = ("parallel", "parallel", "parallel")
    else:
        # -------- fallback: g > 1 and HW % 128 != 0 (unaligned lanes) -------
        slab = C * HW * itemsize
        bb = _largest_divisor_leq(B, max(1, max_block_bytes // slab))
        block_bytes = bb * slab
        grid = (B // bb,)

        in_spec = pl.BlockSpec((bb, groups, cpg, HW),
                               lambda b: (b, 0, 0, 0))
        out_spec = pl.BlockSpec((bb, cpg, groups * HW),
                                lambda b: (b, 0, 0))
        kernel = _make_group_loop_kernel(groups, HW)
        dim_sem = ("parallel",)

    # Double-buffered in + out = 4 x block; leave headroom. 48 MiB is safe on
    # v5e/v6e (128 MiB physical) and matches the suggested v7x budget (64 MiB).
    vmem_limit = max(48 * 1024 * 1024, 4 * block_bytes + 4 * 1024 * 1024)
    vmem_limit = min(vmem_limit, 96 * 1024 * 1024)
    # TODO(synk): truly huge (C*H*W) slabs with H*W % 128 != 0 would also need
    # an HW-tiled fallback; no realistic shuffle-layer shape hits that.

    out = pl.pallas_call(
        kernel,
        out_shape=out_shape,
        grid=grid,
        in_specs=[in_spec],
        out_specs=out_spec,
        compiler_params=pltpu.CompilerParams(
            dimension_semantics=dim_sem,
            vmem_limit_bytes=vmem_limit,
        ),
    )(x4)

    # (B, cpg, g*HW) flattens to exactly the shuffled NCHW layout (channel
    # k = i*g + j at offset i*g*HW + j*HW) -> free reshape.
    return out.reshape(B, C, H, W)


def shuffle_layer_ref(x: jax.Array, groups: int) -> jax.Array:
    """Pure-JAX reference mirroring the PyTorch forward."""
    B, C, H, W = x.shape
    cpg = C // groups
    y = x.reshape(B, groups, cpg, H, W)
    y = jnp.transpose(y, (0, 2, 1, 3, 4))
    return y.reshape(B, -1, H, W)


if __name__ == "__main__":
    key = jax.random.PRNGKey(0)

    # Fast path: HW = 256 (multiple of 128) -> pure-copy DMA permutation.
    B, C, H, W = 2, 8, 16, 16
    groups = 4
    x = jax.random.normal(key, (B, C, H, W), dtype=jnp.float32)
    out = jax.block_until_ready(shuffle_layer(x, groups))
    ref = shuffle_layer_ref(x, groups)
    assert out.shape == ref.shape, (out.shape, ref.shape)
    assert jnp.array_equal(out, ref), "Pallas channel shuffle mismatch (fast path)"

    # Fallback path: HW = 35 (not a multiple of 128) -> in-VMEM group-slab copies.
    x2 = jax.random.normal(jax.random.PRNGKey(0), (3, 6, 5, 7), dtype=jnp.float32)
    out2 = jax.block_until_ready(shuffle_layer(x2, 3))
    ref2 = shuffle_layer_ref(x2, 3)
    assert out2.shape == ref2.shape, (out2.shape, ref2.shape)
    assert jnp.array_equal(out2, ref2), "Pallas channel shuffle mismatch (fallback path)"

    print("KERNEL_OK")
</pallas_src>

<mosaic_0001>
module attributes {stable_mosaic.version = 11 : i64} {
  func.func @_copy_kernel(%arg0: i32, %arg1: i32, %arg2: i32, %arg3: memref<2x1x2x256xf32, #tpu.memory_space<vmem>>, %arg4: memref<2x2x256xf32, #tpu.memory_space<vmem>>) attributes {dimension_semantics = [#tpu.dimension_semantics<parallel>, #tpu.dimension_semantics<parallel>, #tpu.dimension_semantics<parallel>], iteration_bounds = array<i64: 1, 4, 1>, scalar_prefetch = 0 : i64, scratch_operands = 0 : i64, tpu.core_type = #tpu.core_type<tc>, window_params = [{transform_indices = @transform_0, window_bounds = array<i64: 2, 1, 2, 256>}, {transform_indices = @transform_1, window_bounds = array<i64: 2, 2, 256>}]} {
    %c0 = arith.constant 0 : index
    %c0_0 = arith.constant 0 : index
    %c0_1 = arith.constant 0 : index
    %c0_2 = arith.constant 0 : index
    %0 = vector.load %arg3[%c0, %c0_0, %c0_1, %c0_2] : memref<2x1x2x256xf32, #tpu.memory_space<vmem>>, vector<2x1x2x256xf32>
    %1 = vector.shape_cast %0 : vector<2x1x2x256xf32> to vector<2x2x256xf32>
    %c0_3 = arith.constant 0 : index
    %c0_4 = arith.constant 0 : index
    %c0_5 = arith.constant 0 : index
    %2 = vector.load %arg4[%c0_3, %c0_4, %c0_5] : memref<2x2x256xf32, #tpu.memory_space<vmem>>, vector<2x2x256xf32>
    tpu.vector_store %arg4[%c0_3, %c0_4, %c0_5], %1 {strides = array<i32>} : memref<2x2x256xf32, #tpu.memory_space<vmem>>, vector<2x2x256xf32>,
    return
  }
  func.func @transform_0(%arg0: i32, %arg1: i32, %arg2: i32) -> (i32, i32, i32, i32) {
    %c0_i32 = arith.constant 0 : i32
    %c0_i32_0 = arith.constant 0 : i32
    return %arg0, %arg1, %c0_i32, %arg2 : i32, i32, i32, i32
  }
  func.func @transform_1(%arg0: i32, %arg1: i32, %arg2: i32) -> (i32, i32, i32) {
    %c1_i32 = arith.constant 1 : i32
    %0 = arith.muli %arg1, %c1_i32 : i32
    %1 = arith.addi %0, %arg2 : i32
    %c0_i32 = arith.constant 0 : i32
    %c0_i32_0 = arith.constant 0 : i32
    return %arg0, %c0_i32, %1 : i32, i32, i32
  }
}

</mosaic_0001>

<bundles_post_ra>
// kernel: tpu_custom_call.1
= control target key start
LH: loop header
LB: loop body
LE: loop exit
PB: predicated region body
PF: predicated region fallthrough
CT: control target
= control target key end

     0   :  { %6 = vsyncpa [#allocation3], 0  ;;  %s675_s0 = inlined_call_operand.hbm [shape: f32[2,4,2,256], index: 0, kind: input, shape index: {}]   ;;  %s676_s1 = inlined_call_operand.hbm [shape: f32[2,2,1024], index: 1, kind: output, shape index: {}]  }
   0x1   :  { %8 = vsyncpa [#allocation3 + $0x1], 0 }
   0x2   :  { %9 = vsyncpa [#allocation4], 0 }
   0x3   :  { %11 = vsyncpa [#allocation4 + $0x1], 0  ;;  %s504_s6 = smov 0   ;;  %s506_s7 = smov 0  }
   0x4   :  { %s508_s8 = smov 0   ;;  %s510_s9 = smov 0  }
   0x5   :  { %s512_s10 = smov 0   ;;  %s514_s11 = smov 0  }
   0x6 LB: > { %s287_s12 = sadd.s32 4294967295, %s484_s11   ;;  %s288_s13 = sadd.s32 4294967294, %s484_s11   ;;  %s484_s11 = sphi %s514_s11, %s17_s11   ;;  %s480_s10 = sphi %s512_s10, %s689_s10   ;;  %s476_s9 = sphi %s510_s9, %s688_s9   ;;  %s472_s8 = sphi %s508_s8, %s687_s8   ;;  %s468_s7 = sphi %s506_s7, %s686_s7   ;;  %s464_s6 = sphi %s504_s6, %s685_s6  }
   0x7   : > { %s32_s14 = sadd.s32 1, %s480_s10  ;;  %s47_s15 = sadd.s32 1, %s472_s8 }
   0x8   : > { %p34_p0 = scmp.ge.s32.totalorder %s32_s14, 4  ;;  %p54_p1 = scmp.ne.s32.totalorder %s472_s8, %s468_s7 }
   0x9   : > { %p55_p2 = scmp.eq.s32.totalorder %s484_s11, 0  ;;  %p60_p3 = scmp.ne.s32.totalorder %s468_s7, %s464_s6 }
   0xa   : > { %s691_s14 = smov (%p34_p0, %s32_s14), 0  ;;  %p61_p5 = scmp.eq.s32.totalorder %s287_s12, 0 }
   0xb   : > { %p545_p4 = por %p55_p2, %p54_p1  ;;  %s41_s17 = ssub.s32 %s480_s10, %s691_s14 }
   0xc   : > { %p88_p6 = scmp.eq.s32.totalorder %s287_s12, 3  ;;  %p45_p7 = scmp.eq.s32.totalorder %s41_s17, 0 }
   0xd   : > { %p551_p8 = por %p61_p5, %p60_p3  ;;  %p94_p10 = scmp.eq.s32.totalorder %s288_s13, 3 }
   0xe   : > { %p555_p9 = por %p88_p6, %p54_p1  ;;  %p316_p12 = scmp.lt.s32.totalorder %s484_s11, 4 }
   0xf   : > { %s560_s20 = scalar_select %p45_p7, %s472_s8, %s47_s15  }
  0x10   : > { %s680_s19 = scalar_select %p555_p9, 1, 0 }
  0x11   : > { %p562_p11 = por %p94_p10, %p60_p3  ;;  %s114_s22 = sand.u32 1, %s472_s8  }
  0x12   : > { %s291_s23 = sshll.u32 %s114_s22, 3  ;;  %s302_s24 = sshll.u32 %s480_s10, 6 }
  0x13   : > { %s681_s21 = scalar_select %p562_p11, 1, 0 }
  0x14   : > { %s572_s27 = scalar_lea.hbm %s675_s0, %s302_s24  ;;  %s118_s28 = scalar_lea.vmem [#allocation2], %s291_s23 }
  0x15   : > { %s130_s29 = sshll.u32 %s118_s28, 4  ;;  %p578_p13 = pnand %p316_p12, %p545_p4  ;;  %s574_s29 = int_to_ptr.vmem [resolvable:$true] %s130_s29 }
  0x16   : > { %s582_s2 = scalar_lea.sflag [#allocation3], %s114_s22  ;;  %s372_s3 = scalar_lea.hbm %s572_s27, 128 }
  0x17   : > { %p373_p0 = scmp.ne.s32.totalorder %s572_s27, %s372_s3  ;;  %p374_p1 = pneg %p578_p13 }
  0x18   : > { %s377_s12 = scalar_lea.hbm %s675_s0, 512  ;;  %p378_p4 = scmp.lt.u32.totalorder %s572_s27, %s675_s0 }
  0x19   : > { %p375_p2 = pnand %p374_p1, %p373_p0  ;;  %p379_p5 = scmp.lt.u32.totalorder %s377_s12, %s372_s3 }
  0x1a   : > { %p381_p7 = scmp.lt.u32.totalorder %s372_s3, %s572_s27 }
  0x1b   : > { %p376_p3 = pneg %p375_p2  ;;  %p380_p6 = por %p379_p5, %p378_p4 }
  0x1d   : > { %p382_p10 = por %p381_p7, %p380_p6 }
  0x1f   : > { %p383_p12 = pnand %p382_p10, %p376_p3 }
  0x21   : > { %386 = shalt.err (!%p383_p12)
}
  0x22   : > { %s387_s16 = scalar_lea.vmem %s574_s29, 128  ;;  %s486_s17 = smov [#allocation2]  }
  0x23   : > { %p388_p0 = scmp.ne.s32.totalorder %s574_s29, %s387_s16  ;;  %s392_s22 = sshll.u32 %s486_s17, 4  ;;  %s393_s22 = int_to_ptr.vmem [resolvable:$false] %s392_s22 }
  0x24   : > { %s394_s23 = scalar_lea.vmem %s393_s22, 256  ;;  %p395_p9 = scmp.lt.s32.totalorder %s574_s29, %s393_s22 }
  0x25   : > { %p390_p2 = pnand %p388_p0, %p374_p1  ;;  %p396_p4 = scmp.lt.s32.totalorder %s394_s23, %s387_s16 }
  0x27   : > { %p391_p11 = pneg %p390_p2  ;;  %p397_p5 = por %p396_p4, %p395_p9 }
  0x29   : > { %p398_p6 = pnand %p397_p5, %p391_p11 }
  0x2b   : > { %401 = shalt.err (!%p398_p6)
}
  0x2c   : > { %s487_s24 = smov 256   ;;  %s488_s25 = smov 64  }
  0x2d   : > { %s489_s26 = smov 4   ;;  %p294_p1 = scmp.ge.s32.totalorder %s484_s11, 1 }
  0x2e   : > { %311 = dma.hbm_to_vmem [thread:$0]  (!%p578_p13), %s572_s27, 128, %s574_s29, %s582_s2, %s487_s24, %s488_s25, %s489_s26  }
  0x2f   : > { %p138_p3 = scmp.lt.s32.totalorder %s484_s11, 5 }
  0x31   : > { %p139_p7 = pnand %p294_p1, %p138_p3 }
  0x32   : > { %s613_s28 = sand.u32 (!%p139_p7), 1, %s468_s7  }
  0x33   : > { %142 = sbr.rel (%p139_p7) target bundleno = 87 (0x57), region = 24  ;;  %s295_s3 = sshll.u32 (!%p139_p7), %s613_s28, 3 }
  0x34   : > { %s145_s4 = scalar_lea.sflag (!%p139_p7), [#allocation3], %s613_s28  ;;  %s148_s5 = scalar_lea.vmem (!%p139_p7), [#allocation2], %s295_s3 }
  0x3a   : > { %455 = dma.done.wait (%p551_p8), %s145_s4, 128  }
  0x3b   : > { %457 = vsyncadd (%p551_p8), %s145_s4, 4294967168  ;;  %s166_s27 = scalar_lea.vmem [#allocation5], %s295_s3  ;;  %s303_s30 = sshll.u32 %s476_s9, 6  ;;  %v172_v0 = vld [vmem:[%s148_s5] sm:$0xff]  }
  0x3c   : > { %s194_s29 = sshll.u32 %s166_s27, 4  ;;  %s627_s13 = scalar_lea.hbm %s676_s1, %s303_s30  ;;  %174 = vst [vmem:[%s166_s27] sm:$0xff] %v172_v0   ;;  %s622_s29 = int_to_ptr.vmem [resolvable:$true] %s194_s29 }
  0x3d   : > { %s177_s18 = scalar_lea.sflag [#allocation4], %s613_s28  ;;  %s402_s15 = scalar_lea.vmem %s622_s29, 128 }
  0x3e   : > { %p403_p8 = scmp.ne.s32.totalorder %s622_s29, %s402_s15  ;;  %p683_p9 = scmp.ne.s32.totalorder %s680_s19, 0 }
  0x3f   : > { %s490_s16 = smov [#allocation5]  }
  0x40   : > { %p404_p11 = pnand %p403_p8, %p683_p9  ;;  %s406_s9 = sshll.u32 %s490_s16, 4  ;;  %s407_s9 = int_to_ptr.vmem [resolvable:$false] %s406_s9 }
  0x41   : > { %s408_s17 = scalar_lea.vmem %s407_s9, 256  ;;  %p409_p10 = scmp.lt.s32.totalorder %s622_s29, %s407_s9 }
  0x42   : > { %p405_p13 = pneg %p404_p11  ;;  %p410_p12 = scmp.lt.s32.totalorder %s408_s17, %s402_s15 }
  0x44   : > { %p411_p0 = por %p410_p12, %p409_p10 }
  0x46   : > { %p412_p2 = pnand %p411_p0, %p405_p13 }
  0x48   : > { %415 = shalt.err (!%p412_p2)
}
  0x49   : > { %s416_s22 = scalar_lea.hbm %s627_s13, 128  ;;  %s420_s25 = scalar_lea.hbm %s676_s1, 512 }
  0x4a   : > { %p417_p4 = scmp.ne.s32.totalorder %s627_s13, %s416_s22  ;;  %p421_p1 = scmp.lt.u32.totalorder %s627_s13, %s676_s1 }
  0x4b   : > { %p422_p3 = scmp.lt.u32.totalorder %s420_s25, %s416_s22  ;;  %p424_p8 = scmp.lt.u32.totalorder %s416_s22, %s627_s13 }
  0x4c   : > { %p418_p5 = pnand %p417_p4, %p683_p9 }
  0x4d   : > { %p423_p7 = por %p422_p3, %p421_p1 }
  0x4e   : > { %p419_p6 = pneg %p418_p5 }
  0x4f   : > { %p425_p11 = por %p424_p8, %p423_p7 }
  0x51   : > { %p426_p13 = pnand %p425_p11, %p419_p6 }
  0x53   : > { %429 = shalt.err (!%p426_p13)
}
  0x54   : > { %s491_s4 = smov 64   ;;  %s492_s5 = smov 256  }
  0x55   : > { %s493_s27 = smov 4  }
  0x56   : > { %306 = dma.vmem_to_hbm [thread:$0]  (%p683_p9), %s622_s29, 128, %s627_s13, %s177_s18, %s491_s4, %s492_s5, %s493_s27  }
  0x57 PF: > { %p317_p10 = scmp.ge.s32.totalorder %s484_s11, 2  ;;  %s209_s30 = sand.u32 1, %s464_s6  }
  0x58   : > { %p684_p12 = scmp.ne.s32.totalorder %s681_s21, 0  ;;  %s210_s2 = scalar_lea.sflag [#allocation4], %s209_s30 }
  0x5a   : > { %p313_p0 = pnand %p317_p10, %p684_p12 }
  0x5c   : > { %459 = dma.done.wait (!%p313_p0), %s210_s2, 128  }
  0x5d   : > { %461 = vsyncadd (!%p313_p0), %s210_s2, 4294967168  ;;  %s17_s11 = sadd.s32 1, %s484_s11   ;;  %s685_s6 = smov %s468_s7 }
  0x5e   : > { %p14_p2 = scmp.ge.s32.totalorder %s17_s11, 6   ;;  %s686_s7 = smov %s472_s8 }
  0x5f   : > { %s687_s8 = smov %s560_s20  ;;  %s688_s9 = smov %s480_s10 }
  0x60   : > { %s689_s10 = smov %s691_s14  ;;  %16 = sbr.rel (!%p14_p2) target bundleno = 6 (0x6), region = 69 }
  0x67   :  { %215 = vsyncpa [#allocation3], 1 }
  0x68   :  { %217 = vsyncpa [#allocation3 + $0x1], 1 }
  0x69   :  { %218 = vsyncpa [#allocation4], 1 }
  0x6a   :  { %220 = vsyncpa [#allocation4 + $0x1], 1 }

</bundles_post_ra>
